<compile_context>
chip_gen: v6e
topology: v6e:2x2x1
jax: 0.10.0
libtpu: 0.0.40
codegen_flags: <defaults>
</compile_context>

<pallas_src>
import functools

import jax
import jax.numpy as jnp
from jax.experimental import pallas as pl
from jax.experimental.pallas import tpu as pltpu

_HIDDEN = 12  # hidden width of conv_du (fixed by the PyTorch module)


def _round_up(x, m):
    return (x + m - 1) // m * m


def _vmem_capacity_bytes():
    # Query per-core VMEM when possible; otherwise a generation-aware fallback.
    try:
        return int(pltpu.get_tpu_info().vmem_capacity_bytes)
    except Exception:
        pass
    try:
        kind = jax.devices()[0].device_kind.lower()
    except Exception:
        kind = ""
    if "v7" in kind:
        return 64 * 1024 * 1024
    if "v5" in kind or "v6" in kind:
        return 128 * 1024 * 1024
    return 64 * 1024 * 1024  # unknown chip: be conservative


# ---------- single-pass kernel: pool -> 1x1 MLP -> sigmoid -> scale ------------

def _ca_fused_kernel(x_ref, w1t_ref, b1_ref, w2t_ref, b2_ref, o_ref, *, inv_hw):
    # x_ref: (TB, C, HW)   w1t: (C, 12)  b1: (1, 12)   w2t: (12, C)  b2: (1, C)
    # Global average pool over the logical HW extent (f32 accumulation).  The
    # logical shape is exact, so Mosaic masks any physical lane padding.
    pooled = jnp.sum(x_ref[...].astype(jnp.float32), axis=-1) * inv_hw      # (TB, C)

    # conv_du[0]: 1x1 conv C -> 12, bias, ReLU
    h = jnp.dot(pooled, w1t_ref[...], preferred_element_type=jnp.float32)
    h = jnp.maximum(h + b1_ref[...], 0.0)                                   # (TB, 12)

    # conv_du[2]: 1x1 conv 12 -> C, bias, Sigmoid
    y = jnp.dot(h, w2t_ref[...], preferred_element_type=jnp.float32) + b2_ref[...]
    scale = jax.nn.sigmoid(y).astype(x_ref.dtype)                           # (TB, C)

    # Re-read x from VMEM for the epilogue (don't keep the big tile live in
    # vregs across the MLP/sigmoid chain); multiply in the input dtype.
    o_ref[...] = (x_ref[...] * scale[:, :, None]).astype(o_ref.dtype)


# ---------- two-pass fallback: lane-tiled broadcast multiply -------------------

def _ca_scale_kernel(scale_ref, x_ref, o_ref):
    # scale_ref: (1, C, 1)   x_ref / o_ref: (1, C, THW)
    o_ref[...] = (x_ref[...] * scale_ref[...]).astype(o_ref.dtype)


def ca_layer_4(x_nchw, w1, b1, w2, b2, *, _force_two_pass=False):
    """CALayer_4 forward.  x_nchw: (N, C, H, W).  Weights in PyTorch Conv2d layout:
       w1: (12, C, 1, 1), b1: (12,), w2: (C, 12, 1, 1), b2: (C,)."""
    N, C, H, W = x_nchw.shape
    HW = H * W
    dtype = x_nchw.dtype
    dbytes = jnp.dtype(dtype).itemsize

    # Free metadata reshape -- no HBM padding copy.
    x = x_nchw.reshape(N, C, HW)

    # 1x1 conv weights -> matmul form (tiny glue outside the hot path).
    w1t = w1.reshape(_HIDDEN, C).T.astype(jnp.float32)    # (C, 12)
    w2t = w2.reshape(C, _HIDDEN).T.astype(jnp.float32)    # (12, C)
    b1r = b1.reshape(1, _HIDDEN).astype(jnp.float32)
    b2r = b2.reshape(1, C).astype(jnp.float32)

    # ---- VMEM accounting using layout-padded sizes ----------------------------
    vmem_cap = _vmem_capacity_bytes()
    sub = {4: 8, 2: 16, 1: 32}.get(dbytes, 8)              # sublane quantum
    c_pad = _round_up(C, sub)
    hw_pad = _round_up(HW, 128)
    bytes_per_n = c_pad * hw_pad * dbytes                  # one batch row (in == out)
    weight_bytes = 2 * 4 * (2 * C * _HIDDEN + _HIDDEN + C)  # double-buffered f32 weights
    headroom = 2 << 20                                      # Mosaic internal scratch etc.
    usable = max(0, int(vmem_cap * 0.85) - weight_bytes - headroom)

    single_pass = (4 * bytes_per_n <= usable) and not _force_two_pass

    if single_pass:
        # Cap the per-step input tile at ~4 MiB (in+out, double-buffered:
        # ~16 MiB of VMEM) and aim for >= 8 grid steps for pipeline overlap.
        tile_cap = min(4 << 20, max(1, usable // 4))
        tb_bytes = max(1, tile_cap // bytes_per_n)
        tb_grid = max(1, N // 8)
        TB = int(max(1, min(tb_bytes, tb_grid, N)))
        grid_n = pl.cdiv(N, TB)

        needed = 4 * TB * bytes_per_n + weight_bytes + headroom
        vmem_limit = int(min(vmem_cap * 0.9, max(needed + (8 << 20), 32 << 20)))

        cost = pl.CostEstimate(
            flops=3 * N * C * HW + 4 * N * C * _HIDDEN,
            transcendentals=N * C,
            bytes_accessed=2 * N * C * HW * dbytes)

        out = pl.pallas_call(
            functools.partial(_ca_fused_kernel, inv_hw=1.0 / HW),
            out_shape=jax.ShapeDtypeStruct((N, C, HW), dtype),
            grid_spec=pltpu.PrefetchScalarGridSpec(
                num_scalar_prefetch=0,
                grid=(grid_n,),
                in_specs=[
                    pl.BlockSpec((TB, C, HW), lambda n: (n, 0, 0)),    # x slab
                    pl.BlockSpec((C, _HIDDEN), lambda n: (0, 0)),      # w1^T
                    pl.BlockSpec((1, _HIDDEN), lambda n: (0, 0)),      # b1
                    pl.BlockSpec((_HIDDEN, C), lambda n: (0, 0)),      # w2^T
                    pl.BlockSpec((1, C), lambda n: (0, 0)),            # b2
                ],
                out_specs=pl.BlockSpec((TB, C, HW), lambda n: (n, 0, 0)),
            ),
            # "parallel" lets Mosaic shard the batch grid across TensorCores;
            # switch to pltpu.CORE_PARALLEL if a trace shows one idle core.
            compiler_params=pltpu.CompilerParams(
                dimension_semantics=("parallel",),
                vmem_limit_bytes=vmem_limit),
            cost_estimate=cost,
        )(x, w1t, b1r, w2t, b2r)
        return out.reshape(N, C, H, W)

    # ---- Two-pass fallback: pool + tiny MLP in XLA over the unpadded view, ----
    # ---- then a lane-tiled Pallas broadcast-multiply (3 HBM passes = floor). --
    pooled = jnp.mean(x.astype(jnp.float32), axis=-1)                  # (N, C)
    h = jnp.maximum(pooled @ w1t + b1r, 0.0)
    scale = jax.nn.sigmoid(h @ w2t + b2r).astype(dtype)                # (N, C)
    scale3 = scale.reshape(N, C, 1)

    blk_cap = max(1, usable // 4)                       # per-block in bytes (2x buffered in+out)
    thw_lanes = (blk_cap // max(1, c_pad * dbytes)) // 128 * 128
    if thw_lanes < 128:
        # Even a (1, C, 128) tile does not fit VMEM (pathological C): plain XLA.
        return (x * scale3).astype(dtype).reshape(N, C, H, W)

    THW = min(hw_pad, thw_lanes, 16 * 1024)
    if THW > 1024:
        THW = max(1024, (THW // 1024) * 1024)           # keep >= 1024 lanes (HBM roofline)
    if THW >= HW:
        THW = HW                                        # full extent (exempt from 128 rule)
    grid_s = pl.cdiv(HW, THW)

    blk_bytes = c_pad * _round_up(THW, 128) * dbytes
    vmem_limit = int(min(vmem_cap * 0.9,
                         max(4 * blk_bytes + headroom + (8 << 20), 32 << 20)))

    out = pl.pallas_call(
        _ca_scale_kernel,
        out_shape=jax.ShapeDtypeStruct((N, C, HW), dtype),
        grid_spec=pltpu.PrefetchScalarGridSpec(
            num_scalar_prefetch=0,
            grid=(N, grid_s),
            in_specs=[
                pl.BlockSpec((1, C, 1), lambda n, s: (n, 0, 0)),       # per-(n,c) scale
                pl.BlockSpec((1, C, THW), lambda n, s: (n, 0, s)),     # x lane tile
            ],
            out_specs=pl.BlockSpec((1, C, THW), lambda n, s: (n, 0, s)),
        ),
        compiler_params=pltpu.CompilerParams(
            dimension_semantics=("parallel", "parallel"),
            vmem_limit_bytes=vmem_limit),
        cost_estimate=pl.CostEstimate(
            flops=N * C * HW, transcendentals=0,
            bytes_accessed=2 * N * C * HW * dbytes),
    )(scale3, x)
    return out.reshape(N, C, H, W)


def _reference(x, w1, b1, w2, b2):
    # Plain-JAX reference of the PyTorch forward for verification.
    pooled = jnp.mean(x.astype(jnp.float32), axis=(2, 3))            # (N, C)
    h = pooled @ w1.reshape(_HIDDEN, -1).T + b1                      # (N, 12)
    h = jnp.maximum(h, 0.0)
    y = h @ w2.reshape(-1, _HIDDEN).T + b2                           # (N, C)
    scale = jax.nn.sigmoid(y)
    return (x.astype(jnp.float32) * scale[:, :, None, None]).astype(x.dtype)


if __name__ == "__main__":
    key = jax.random.PRNGKey(0)
    k_x, k_w1, k_b1, k_w2, k_b2, k_x2, k_x3 = jax.random.split(key, 7)

    N, C, H, W = 2, 4, 16, 16
    x = jax.random.normal(k_x, (N, C, H, W), dtype=jnp.float32)

    # Conv2d-shaped parameters (out, in, 1, 1).
    w1 = jax.random.normal(k_w1, (_HIDDEN, C, 1, 1), dtype=jnp.float32) * 0.2
    b1 = jax.random.normal(k_b1, (_HIDDEN,), dtype=jnp.float32) * 0.1
    w2 = jax.random.normal(k_w2, (C, _HIDDEN, 1, 1), dtype=jnp.float32) * 0.2
    b2 = jax.random.normal(k_b2, (C,), dtype=jnp.float32) * 0.1

    # Main (single-pass) path.
    out = jax.block_until_ready(ca_layer_4(x, w1, b1, w2, b2))
    ref = _reference(x, w1, b1, w2, b2)
    assert out.shape == (N, C, H, W)
    assert jnp.allclose(out, ref, atol=1e-5, rtol=1e-5), "single-pass mismatch"

    # Non-multiple-of-128 spatial size: exercises the unpadded HW handling.
    x_odd = jax.random.normal(k_x2, (N, C, 13, 13), dtype=jnp.float32)
    out2 = jax.block_until_ready(ca_layer_4(x_odd, w1, b1, w2, b2))
    ref2 = _reference(x_odd, w1, b1, w2, b2)
    assert jnp.allclose(out2, ref2, atol=1e-5, rtol=1e-5), "odd-HW mismatch"

    # Batch count that forces a partial edge block (cdiv grid with TB=2).
    x_big = jax.random.normal(k_x3, (17, C, 8, 8), dtype=jnp.float32)
    out3 = jax.block_until_ready(ca_layer_4(x_big, w1, b1, w2, b2))
    ref3 = _reference(x_big, w1, b1, w2, b2)
    assert jnp.allclose(out3, ref3, atol=1e-5, rtol=1e-5), "edge-block mismatch"

    # Two-pass fallback path (what runs when a slab exceeds the VMEM budget).
    out4 = jax.block_until_ready(ca_layer_4(x, w1, b1, w2, b2, _force_two_pass=True))
    assert jnp.allclose(out4, ref, atol=1e-5, rtol=1e-5), "two-pass mismatch"

    print("KERNEL_OK")
</pallas_src>

<mosaic_0001>
module attributes {stable_mosaic.version = 11 : i64} {
  func.func @_ca_fused_kernel(%arg0: i32, %arg1: memref<1x4x256xf32, #tpu.memory_space<vmem>>, %arg2: memref<4x12xf32, #tpu.memory_space<vmem>>, %arg3: memref<1x12xf32, #tpu.memory_space<vmem>>, %arg4: memref<12x4xf32, #tpu.memory_space<vmem>>, %arg5: memref<1x4xf32, #tpu.memory_space<vmem>>, %arg6: memref<1x4x256xf32, #tpu.memory_space<vmem>>) attributes {dimension_semantics = [#tpu.dimension_semantics<parallel>], iteration_bounds = array<i64: 2>, scalar_prefetch = 0 : i64, scratch_operands = 0 : i64, tpu.core_type = #tpu.core_type<tc>, window_params = [{transform_indices = @transform_0, window_bounds = array<i64: 1, 4, 256>}, {pipeline_mode = #tpu.pipeline_mode<synchronous>, transform_indices = @transform_1, window_bounds = array<i64: 4, 12>}, {pipeline_mode = #tpu.pipeline_mode<synchronous>, transform_indices = @transform_2, window_bounds = array<i64: 1, 12>}, {pipeline_mode = #tpu.pipeline_mode<synchronous>, transform_indices = @transform_3, window_bounds = array<i64: 12, 4>}, {pipeline_mode = #tpu.pipeline_mode<synchronous>, transform_indices = @transform_4, window_bounds = array<i64: 1, 4>}, {transform_indices = @transform_5, window_bounds = array<i64: 1, 4, 256>}]} {
    %c0 = arith.constant 0 : index
    %c0_0 = arith.constant 0 : index
    %c0_1 = arith.constant 0 : index
    %0 = vector.load %arg1[%c0, %c0_0, %c0_1] : memref<1x4x256xf32, #tpu.memory_space<vmem>>, vector<1x4x256xf32>
    %cst = arith.constant dense<0.000000e+00> : vector<1x4xf32>
    %1 = vector.multi_reduction <add>, %0, %cst [2] : vector<1x4x256xf32> to vector<1x4xf32>
    %cst_2 = arith.constant 3.906250e-03 : f32
    %2 = vector.broadcast %cst_2 : f32 to vector<1x4xf32>
    %3 = arith.mulf %1, %2 : vector<1x4xf32>
    %c0_3 = arith.constant 0 : index
    %c0_4 = arith.constant 0 : index
    %4 = vector.load %arg2[%c0_3, %c0_4] : memref<4x12xf32, #tpu.memory_space<vmem>>, vector<4x12xf32>
    %cst_5 = arith.constant dense<0.000000e+00> : vector<1x12xf32>
    %5 = tpu.matmul %3, %4, %cst_5 {dimension_numbers = #tpu.dot_dimension_numbers<[1], [0], [0], [1], [0, 0, 1, 1], [], []>} : vector<1x4xf32>, vector<4x12xf32>, vector<1x12xf32> -> vector<1x12xf32>
    %c0_6 = arith.constant 0 : index
    %c0_7 = arith.constant 0 : index
    %6 = vector.load %arg3[%c0_6, %c0_7] : memref<1x12xf32, #tpu.memory_space<vmem>>, vector<1x12xf32>
    %7 = arith.addf %5, %6 : vector<1x12xf32>
    %cst_8 = arith.constant 0.000000e+00 : f32
    %8 = vector.broadcast %cst_8 : f32 to vector<1x12xf32>
    %9 = arith.maximumf %7, %8 : vector<1x12xf32>
    %c0_9 = arith.constant 0 : index
    %c0_10 = arith.constant 0 : index
    %10 = vector.load %arg4[%c0_9, %c0_10] : memref<12x4xf32, #tpu.memory_space<vmem>>, vector<12x4xf32>
    %cst_11 = arith.constant dense<0.000000e+00> : vector<1x4xf32>
    %11 = tpu.matmul %9, %10, %cst_11 {dimension_numbers = #tpu.dot_dimension_numbers<[1], [0], [0], [1], [0, 0, 1, 1], [], []>} : vector<1x12xf32>, vector<12x4xf32>, vector<1x4xf32> -> vector<1x4xf32>
    %c0_12 = arith.constant 0 : index
    %c0_13 = arith.constant 0 : index
    %12 = vector.load %arg5[%c0_12, %c0_13] : memref<1x4xf32, #tpu.memory_space<vmem>>, vector<1x4xf32>
    %13 = arith.addf %11, %12 : vector<1x4xf32>
    %14 = arith.negf %13 : vector<1x4xf32>
    %15 = math.exp %14 : vector<1x4xf32>
    %cst_14 = arith.constant 1.000000e+00 : f32
    %16 = vector.broadcast %cst_14 : f32 to vector<1x4xf32>
    %17 = arith.addf %16, %15 : vector<1x4xf32>
    %18 = arith.divf %16, %17 : vector<1x4xf32>
    %c0_15 = arith.constant 0 : index
    %c0_16 = arith.constant 0 : index
    %c0_17 = arith.constant 0 : index
    %19 = vector.load %arg1[%c0_15, %c0_16, %c0_17] : memref<1x4x256xf32, #tpu.memory_space<vmem>>, vector<1x4x256xf32>
    %20 = vector.shape_cast %18 : vector<1x4xf32> to vector<1x4x1xf32>
    %21 = vector.broadcast %20 : vector<1x4x1xf32> to vector<1x4x256xf32>
    %22 = arith.mulf %19, %21 : vector<1x4x256xf32>
    %c0_18 = arith.constant 0 : index
    %c0_19 = arith.constant 0 : index
    %c0_20 = arith.constant 0 : index
    %23 = vector.load %arg6[%c0_18, %c0_19, %c0_20] : memref<1x4x256xf32, #tpu.memory_space<vmem>>, vector<1x4x256xf32>
    tpu.vector_store %arg6[%c0_18, %c0_19, %c0_20], %22 {strides = array<i32>} : memref<1x4x256xf32, #tpu.memory_space<vmem>>, vector<1x4x256xf32>,
    return
  }
  func.func @transform_0(%arg0: i32) -> (i32, i32, i32) {
    %c0_i32 = arith.constant 0 : i32
    %c0_i32_0 = arith.constant 0 : i32
    %c0_i32_1 = arith.constant 0 : i32
    return %arg0, %c0_i32, %c0_i32_0 : i32, i32, i32
  }
  func.func @transform_1(%arg0: i32) -> (i32, i32) {
    %c0_i32 = arith.constant 0 : i32
    %c0_i32_0 = arith.constant 0 : i32
    %c0_i32_1 = arith.constant 0 : i32
    return %c0_i32, %c0_i32_0 : i32, i32
  }
  func.func @transform_2(%arg0: i32) -> (i32, i32) {
    %c0_i32 = arith.constant 0 : i32
    %c0_i32_0 = arith.constant 0 : i32
    %c0_i32_1 = arith.constant 0 : i32
    return %c0_i32, %c0_i32_0 : i32, i32
  }
  func.func @transform_3(%arg0: i32) -> (i32, i32) {
    %c0_i32 = arith.constant 0 : i32
    %c0_i32_0 = arith.constant 0 : i32
    %c0_i32_1 = arith.constant 0 : i32
    return %c0_i32, %c0_i32_0 : i32, i32
  }
  func.func @transform_4(%arg0: i32) -> (i32, i32) {
    %c0_i32 = arith.constant 0 : i32
    %c0_i32_0 = arith.constant 0 : i32
    %c0_i32_1 = arith.constant 0 : i32
    return %c0_i32, %c0_i32_0 : i32, i32
  }
  func.func @transform_5(%arg0: i32) -> (i32, i32, i32) {
    %c0_i32 = arith.constant 0 : i32
    %c0_i32_0 = arith.constant 0 : i32
    %c0_i32_1 = arith.constant 0 : i32
    return %arg0, %c0_i32, %c0_i32_0 : i32, i32, i32
  }
}

</mosaic_0001>

<bundles_post_ra>
// kernel: tpu_custom_call.1
= control target key start
LH: loop header
LB: loop body
LE: loop exit
PB: predicated region body
PF: predicated region fallthrough
CT: control target
= control target key end

     0   :  { %10 = vsyncpa [#allocation3], 0  ;;  %s783_s0 = inlined_call_operand.vmem [shape: f32[2,4,256], index: 0, kind: input, shape index: {}]   ;;  %s784_s1 = inlined_call_operand.vmem [shape: f32[4,12], index: 1, kind: input, shape index: {}]   ;;  %s785_s2 = inlined_call_operand.vmem [shape: f32[1,12], index: 2, kind: input, shape index: {}]   ;;  %s786_s3 = inlined_call_operand.vmem [shape: f32[12,4], index: 3, kind: input, shape index: {}]   ;;  %s787_s4 = inlined_call_operand.vmem [shape: f32[1,4], index: 4, kind: input, shape index: {}]   ;;  %s788_s5 = inlined_call_operand.hbm [shape: f32[2,4,256], index: 5, kind: output, shape index: {}]  }
   0x1   :  { %12 = vsyncpa [#allocation3 + $0x1], 0  ;;  %s677_s18 = smov 0   ;;  %s679_s19 = smov 0  }
   0x2   :  { %s681_s20 = smov 0   ;;  %s683_s21 = smov 0  }
   0x3 LB: > { %s698_s22 = sadd.s32 4294967295, %s641_s21   ;;  %s498_s23 = sadd.s32 4294967294, %s641_s21   ;;  %s641_s21 = sphi %s683_s21, %s794_s21   ;;  %s637_s20 = sphi %s681_s20, %s793_s20   ;;  %s633_s19 = sphi %s679_s19, %s792_s19   ;;  %s629_s18 = sphi %s677_s18, %s791_s18  }
   0x4   : > { %s702_s24 = sadd.s32 1, %s641_s21   ;;  %s135_s25 = sadd.s32 1, %s637_s20 }
   0x5   : > { %s132_s26 = ssub.s32 %s641_s21, %s702_s24  ;;  %p145_p0 = scmp.ne.s32.totalorder %s637_s20, %s633_s19 }
   0x6   : > { %p133_p1 = scmp.eq.s32.totalorder %s132_s26, 0  ;;  %p146_p2 = scmp.eq.s32.totalorder %s698_s22, 1 }
   0x7   : > { %p151_p3 = scmp.ne.s32.totalorder %s633_s19, %s629_s18  ;;  %p152_p4 = scmp.eq.s32.totalorder %s498_s23, 1 }
   0x8   : > { %s713_s27 = scalar_select %p133_p1, %s637_s20, %s135_s25  }
   0x9   : > { %p715_p5 = por %p146_p2, %p145_p0  ;;  %p719_p6 = por %p152_p4, %p151_p3 }
   0xa   : > { %p501_p7 = scmp.ge.s32.totalorder %s641_s21, 1  ;;  %p190_p8 = scmp.lt.s32.totalorder %s641_s21, 3 }
   0xc   : > { %p191_p9 = pnand %p501_p7, %p190_p8 }
   0xd   : > { %p218_p10 = scmp.lt.s32.totalorder (!%p191_p9), %s698_s22, 1  ;;  %s215_s26 = sand.u32 (!%p191_p9), 1, %s633_s19  }
   0xe   : > { %194 = sbr.rel (%p191_p9) target bundleno = 729 (0x2d9), region = 40  ;;  %s425_s12 = scalar_lea.sflag (!%p191_p9), [#allocation3], %s215_s26 }
   0xf   : > { %s646_s14 = smov (!%p191_p9), [#allocation2]  }
  0x10   : > { %s585_s15 = sshll.u32 (!%p191_p9), %s646_s14, 4  ;;  %s586_s15 = int_to_ptr.vmem [resolvable:$false] %s585_s15 }
  0x13   : > { %s219_s30 = scalar_select %p218_p10, %s698_s22, 1  ;;  %vm227_vm0 = vcmask 1043456   ;;  %v643_v5 = vmov 0.0   ;;  %v234_v6 = vld [vmem:[%s784_s1] sm:$0xf]  ;;  %vm644_vm1 = vmmov 0   ;;  %v237_v7 = vlaneseq }
  0x14   : > { %522 = vmatprep.subr.mxu0 %v643_v5  ;;  %527 = vmatprep.subr.mxu1 %v643_v5  ;;  %vm243_vm2 = vcmask 31744   ;;  %v321_v14 = vld [vmem:[%s786_s3 + $0x8] sm:$0xf]  ;;  %v320_v15 = vld [vmem:[%s786_s3] sm:$0xff]  ;;  %vm323_vm3 = vcmask 97280  }
  0x15   : > { %s515_s6 = sshll.u32 %s219_s30, 3  ;;  %523 = vmatpush3.msk.msra.mxu0 %vm227_vm0, %v234_v6  ;;  %524 = vmatprep.mubr.msk.f32.mxu0 %vm644_vm1, %v643_v5  ;;  %v238_v8 = vand.u32 127, %v237_v7  ;;  %v240_v9 = vshrl.u32 %v237_v7, 7  ;;  %v235_v16 = vld [vmem:[%s785_s2] sm:$0x1]  ;;  %s502_s30 = sshll.u32 %s215_s26, 3 }
  0x16   : > { %s222_s9 = scalar_lea.vmem %s783_s0, %s515_s6  ;;  %531 = vmatprep.mubr.msk.f32.mxu1 %vm644_vm1, %v643_v5  ;;  %528 = vmatpush3.msk.msra.mxu1 %vm227_vm0, %v321_v14  ;;  %v322_v21 = vld [vmem:[%s787_s4] sm:$0x1]  ;;  %v645_v31 = vmov 839922192   ;;  %s516_s6 = sshll.u32 %s698_s22, 7 }
  0x17   : > { %v223_v0 = vld [vmem:[%s222_s9] sm:$0xff]  ;;  %v241_v10 = vsub.s32 %v238_v8, %v240_v9  ;;  %529 = vmatprep.subr.mxu1 %v643_v5  ;;  %v408_v28 = vsub.s32 0, %v240_v9  ;;  %v415_v32 = vunpack.c.l.s4 %v645_v31  ;;  %s217_s7 = scalar_lea.vmem [#allocation2], %s502_s30  ;;  %s437_s11 = scalar_lea.hbm %s788_s5, %s516_s6 }
  0x18   : > { %v225_v1 = vcombine.high %v223_v0, %v223_v0  ;;  %v228_v2 = vsel %vm227_vm0, %v223_v0, 0.0  ;;  %530 = vmatpush3.msra.mxu1 %v320_v15  ;;  %s439_s8 = sshll.u32 %s217_s7, 4  ;;  %s587_s22 = scalar_lea.vmem %s586_s15, 256  ;;  %s440_s8 = int_to_ptr.vmem [resolvable:$true] %s439_s8 }
  0x19   : > { %v416_v33 = vunpack.c.0.s8 %v415_v32  ;;  %s581_s13 = scalar_lea.vmem %s440_s8, 128  ;;  %p588_p0 = scmp.lt.s32.totalorder %s440_s8, %s586_s15 }
  0x1a   : > { %v229_v3 = vsel %vm227_vm0, %v225_v1, 0.0  ;;  %p582_p11 = scmp.ne.s32.totalorder %s440_s8, %s581_s13  ;;  %p589_p1 = scmp.lt.s32.totalorder %s587_s22, %s581_s13 }
  0x1b   : > { %v230_v4 = vadd.f32 %v229_v3, %v228_v2  ;;  %v419_v34 = vsub.s32 %v416_v33, %v240_v9 }
  0x1c   : > { %p583_p12 = pnand %p582_p11, %p715_p5  ;;  %p590_p2 = por %p589_p1, %p588_p0 }
  0x1d   : > { %231 = vadd.xlane.f32.xlu0 %v230_v4 }
  0x1e   : > { %p584_p13 = pneg %p583_p12 }
  0x20   : > { %p591_p3 = pnand %p590_p2, %p584_p13 }
  0xa6   : > { %v232_v11 = vpop.xlane.xlu0 %231 }
  0xa7   : > { %v233_v12 = vmul.f32 0.00390625, %v232_v11 }
  0xa9   : > { %v242_v13 = vrot.slane %v233_v12, %v241_v10 }
  0xab   : > { %525 = vmatmul.mubr.msk.f32.vlgmr.msra.gmra.mxu0 %vm243_vm2, %v242_v13 }
 0x16b   : > { %v315_v17 = vpop.f32.mrf.mxu0 }
 0x16c   : > { %v316_v18 = vadd.f32 %v315_v17, %v235_v16 }
 0x16d   : > { %v526_v19 = vpop.f32.mrf.mxu0 }
 0x16e   : > { %v319_v20 = vmax.f32 %v316_v18, 0.0 }
 0x170   : > { %532 = vmatmul.mubr.msk.f32.vlgmr.msra.gmra.mxu1 %vm323_vm3, %v319_v20 }
 0x230   : > { %v396_v22 = vpop.f32.mrf.mxu1 }
 0x231   : > { %v397_v23 = vadd.f32 %v396_v22, %v322_v21 }
 0x232   : > { %v533_v24 = vpop.f32.mrf.mxu1 }
 0x233   : > { %v509_v25 = vmul.f32 -1.442695, %v397_v23 }
 0x235   : > { %577 = vpow2.f32 %v509_v25 }
 0x242   : > { %v578_v26 = vpop.eup %577 }
 0x243   : > { %v403_v27 = vadd.f32 1.0, %v578_v26 }
 0x245   : > { %579 = vrcp.f32 %v403_v27 }
 0x252   : > { %v580_v29 = vpop.eup %579 }
 0x253   : > { %v409_v30 = vrot.slane %v580_v29, %v408_v28 }
 0x255   : > { %411 = vbcast.lane.b32.xlu0 %v409_v30, 256 }
 0x2c7   : > { %v412_v35 = vpop.permute.xlu0 %411 }
 0x2c8   : > { %v420_v36 = vrot.slane %v412_v35, %v419_v34 }
 0x2ca   : > { %v422_v37 = vmul.f32 %v420_v36, %v223_v0 }
 0x2cc   : > { %423 = vst [vmem:[%s217_s7] sm:$0xff] %v422_v37 }
 0x2cd   : > { %594 = shalt.err (!%p591_p3)
}
 0x2ce   : > { %s595_s16 = scalar_lea.hbm %s437_s11, 128  ;;  %s599_s25 = scalar_lea.hbm %s788_s5, 256 }
 0x2cf   : > { %p596_p4 = scmp.ne.s32.totalorder %s437_s11, %s595_s16  ;;  %p600_p9 = scmp.lt.s32.totalorder %s437_s11, %s788_s5 }
 0x2d0   : > { %p601_p10 = scmp.lt.s32.totalorder %s599_s25, %s595_s16 }
 0x2d1   : > { %p597_p7 = pnand %p596_p4, %p715_p5 }
 0x2d2   : > { %p602_p11 = por %p601_p10, %p600_p9 }
 0x2d3   : > { %p598_p8 = pneg %p597_p7 }
 0x2d5   : > { %p603_p12 = pnand %p602_p11, %p598_p8 }
 0x2d7   : > { %606 = shalt.err (!%p603_p12)
}
 0x2d8   : > { %534 = dma.vmem_to_hbm [thread:$0]  (%p715_p5), %s440_s8, 128, %s437_s11, %s425_s12  }
 0x2d9 PF: > { %p540_p13 = scmp.ge.s32.totalorder %s641_s21, 2  ;;  %s451_s6 = sand.u32 1, %s629_s18  }
 0x2da   : > { %s452_s7 = scalar_lea.sflag [#allocation3], %s451_s6 }
 0x2db   : > { %p537_p0 = pnand %p540_p13, %p719_p6 }
 0x2dd   : > { %p538_p1 = pneg %p537_p0 }
 0x2df   : > { %624 = dma.done.wait (%p538_p1), %s452_s7, 128  }
 0x2e0   : > { %626 = vsyncadd (%p538_p1), %s452_s7, 4294967168  ;;  %p15_p2 = scmp.ge.s32.totalorder %s702_s24, 4   ;;  %s791_s18 = smov %s633_s19 }
 0x2e1   : > { %s792_s19 = smov %s637_s20  ;;  %s793_s20 = smov %s713_s27 }
 0x2e2   : > { %s794_s21 = smov %s702_s24  ;;  %17 = sbr.rel (!%p15_p2) target bundleno = 3 (0x3), region = 75 }
 0x2e7   :  { %457 = vsyncpa [#allocation3], 1 }
 0x2e8   :  { %459 = vsyncpa [#allocation3 + $0x1], 1 }

</bundles_post_ra>
